<compile_context>
chip_gen: v5e
topology: v5e:2x2
jax: 0.10.0
libtpu: 0.0.40
codegen_flags: <defaults>
</compile_context>

<pallas_src>
import functools

import jax
import jax.numpy as jnp
from jax.experimental import pallas as pl
from jax.experimental.pallas import tpu as pltpu

LANES = 128  # TPU lane width; last dim of every tile.


# ----------------------------------------------------------------------------
# Kernel
# ----------------------------------------------------------------------------
def _charbonnier_kernel(x_ref, y_ref, o_ref, acc_ref, *, tile_rows, n_valid, eps):
    """Accumulate sum(sqrt((x-y)^2 + eps)) over grid steps.

    x_ref, y_ref: (tile_rows, 128) f32 tiles.
    o_ref:        (1, 1) f32 output (resident across the whole grid).
    acc_ref:      (8, 128) f32 VMEM scratch partial-sum accumulator.
    """
    t = pl.program_id(0)

    @pl.when(t == 0)
    def _init():
        acc_ref[...] = jnp.zeros_like(acc_ref)

    d = x_ref[...] - y_ref[...]
    err = jnp.sqrt(d * d + eps)

    # Mask out flat-index tail padding so padded elements contribute 0
    # (not sqrt(eps)).
    row_ids = jax.lax.broadcasted_iota(jnp.int32, (tile_rows, LANES), 0)
    col_ids = jax.lax.broadcasted_iota(jnp.int32, (tile_rows, LANES), 1)
    flat_idx = (t * tile_rows + row_ids) * LANES + col_ids
    err = jnp.where(flat_idx < n_valid, err, 0.0)

    # Partial reduce along the leading (non-tiled) axis only: pure VPU adds
    # into an (8, 128) accumulator that stays vreg/VMEM resident.
    acc_ref[...] += err.reshape(tile_rows // 8, 8, LANES).sum(axis=0)

    # Single cross-lane/sublane reduction at the very end.
    @pl.when(t == pl.num_programs(0) - 1)
    def _finalize():
        o_ref[...] = jnp.sum(acc_ref[...], keepdims=True)


# ----------------------------------------------------------------------------
# Wrapper
# ----------------------------------------------------------------------------
def l1_charbonnier_loss(x, y, *, eps=1e-6, max_tile_rows=1024):
    """loss = sum(sqrt((x - y)^2 + eps)); x and y may have any (equal) shape."""
    assert x.shape == y.shape, (x.shape, y.shape)

    n = x.size
    xf = jnp.ravel(x).astype(jnp.float32)
    yf = jnp.ravel(y).astype(jnp.float32)

    rows = pl.cdiv(n, LANES)
    tile_rows = min(max_tile_rows, ((rows + 7) // 8) * 8)   # multiple of 8
    rows_padded = pl.cdiv(rows, tile_rows) * tile_rows
    pad = rows_padded * LANES - n
    if pad:
        xf = jnp.pad(xf, (0, pad))
        yf = jnp.pad(yf, (0, pad))
    x2 = xf.reshape(rows_padded, LANES)
    y2 = yf.reshape(rows_padded, LANES)

    grid = (rows_padded // tile_rows,)
    kernel = functools.partial(
        _charbonnier_kernel, tile_rows=tile_rows, n_valid=n, eps=float(eps))

    out = pl.pallas_call(
        kernel,
        out_shape=jax.ShapeDtypeStruct((1, 1), jnp.float32),
        grid=grid,
        in_specs=[
            pl.BlockSpec((tile_rows, LANES), lambda i: (i, 0)),
            pl.BlockSpec((tile_rows, LANES), lambda i: (i, 0)),
        ],
        out_specs=pl.BlockSpec((1, 1), lambda i: (0, 0)),
        scratch_shapes=[pltpu.VMEM((8, LANES), jnp.float32)],
        compiler_params=pltpu.CompilerParams(
            dimension_semantics=("arbitrary",)),   # output carried across grid
    )(x2, y2)
    return out[0, 0]


def _reference(x, y, eps=1e-6):
    d = x.astype(jnp.float32) - y.astype(jnp.float32)
    return jnp.sum(jnp.sqrt(d * d + eps))


# ----------------------------------------------------------------------------
if __name__ == "__main__":
    key = jax.random.PRNGKey(0)
    k1, k2, k3, k4 = jax.random.split(key, 4)

    # Shapes implied by the module's usage (image tensors): NCHW.
    x = jax.random.normal(k1, (2, 4, 16, 16), jnp.float32)
    y = jax.random.normal(k2, (2, 4, 16, 16), jnp.float32)

    loss_fn = jax.jit(l1_charbonnier_loss)
    loss = loss_fn(x, y)
    jax.block_until_ready(loss)

    ref = _reference(x, y)
    assert bool(jnp.isfinite(loss)), loss
    assert jnp.allclose(loss, ref, rtol=1e-5, atol=1e-3), (loss, ref)

    # Non-(8,128)-aligned shape: exercises the in-kernel tail mask.
    xa = jax.random.normal(k3, (3, 5, 7, 11), jnp.float32)
    ya = jax.random.normal(k4, (3, 5, 7, 11), jnp.float32)
    loss_a = jax.jit(l1_charbonnier_loss)(xa, ya)
    jax.block_until_ready(loss_a)
    assert jnp.allclose(loss_a, _reference(xa, ya), rtol=1e-5, atol=1e-3), (
        loss_a, _reference(xa, ya))

    # Multi-tile path: small tile cap forces several grid steps with the
    # accumulator carried across them.
    loss_b = jax.jit(
        functools.partial(l1_charbonnier_loss, max_tile_rows=8))(x, y)
    jax.block_until_ready(loss_b)
    assert jnp.allclose(loss_b, ref, rtol=1e-5, atol=1e-3), (loss_b, ref)

    print("KERNEL_OK")
</pallas_src>

<mosaic_0001>
module attributes {stable_mosaic.version = 11 : i64} {
  func.func @_charbonnier_kernel(%arg0: i32, %arg1: memref<16x128xf32, #tpu.memory_space<vmem>>, %arg2: memref<16x128xf32, #tpu.memory_space<vmem>>, %arg3: memref<1x1xf32, #tpu.memory_space<vmem>>, %arg4: memref<8x128xf32, #tpu.memory_space<vmem>>) attributes {dimension_semantics = [#tpu.dimension_semantics<arbitrary>], iteration_bounds = array<i64: 1>, scalar_prefetch = 0 : i64, scratch_operands = 1 : i64, tpu.core_type = #tpu.core_type<tc>, window_params = [{transform_indices = @transform_0, window_bounds = array<i64: 16, 128>}, {transform_indices = @transform_1, window_bounds = array<i64: 16, 128>}, {pipeline_mode = #tpu.pipeline_mode<synchronous>, transform_indices = @transform_2, window_bounds = array<i64: 1, 1>}]} {
    %c0_i32 = arith.constant 0 : i32
    %0 = arith.cmpi eq, %arg0, %c0_i32 : i32
    %1 = arith.extui %0 : i1 to i32
    %c0_i32_0 = arith.constant 0 : i32
    %2 = arith.cmpi ne, %1, %c0_i32_0 : i32
    scf.if %2 {
      %cst_12 = arith.constant 0.000000e+00 : f32
      %30 = vector.broadcast %cst_12 : f32 to vector<8x128xf32>
      %c0_13 = arith.constant 0 : index
      %c0_14 = arith.constant 0 : index
      %31 = vector.load %arg4[%c0_13, %c0_14] : memref<8x128xf32, #tpu.memory_space<vmem>>, vector<8x128xf32>
      tpu.vector_store %arg4[%c0_13, %c0_14], %30 {strides = array<i32>} : memref<8x128xf32, #tpu.memory_space<vmem>>, vector<8x128xf32>,
    } else {
    }
    %c0 = arith.constant 0 : index
    %c0_1 = arith.constant 0 : index
    %3 = vector.load %arg1[%c0, %c0_1] : memref<16x128xf32, #tpu.memory_space<vmem>>, vector<16x128xf32>
    %c0_2 = arith.constant 0 : index
    %c0_3 = arith.constant 0 : index
    %4 = vector.load %arg2[%c0_2, %c0_3] : memref<16x128xf32, #tpu.memory_space<vmem>>, vector<16x128xf32>
    %5 = arith.subf %3, %4 : vector<16x128xf32>
    %6 = arith.mulf %5, %5 : vector<16x128xf32>
    %cst = arith.constant 9.99999997E-7 : f32
    %7 = vector.broadcast %cst : f32 to vector<16x128xf32>
    %8 = arith.addf %6, %7 : vector<16x128xf32>
    %9 = math.sqrt %8 : vector<16x128xf32>
    %10 = tpu.iota {dimensions = array<i32: 0>} : vector<16x128xi32>
    %11 = tpu.iota {dimensions = array<i32: 1>} : vector<16x128xi32>
    %c16_i32 = arith.constant 16 : i32
    %12 = arith.muli %arg0, %c16_i32 : i32
    %13 = vector.broadcast %12 : i32 to vector<16x128xi32>
    %14 = arith.addi %13, %10 : vector<16x128xi32>
    %c128_i32 = arith.constant 128 : i32
    %15 = vector.broadcast %c128_i32 : i32 to vector<16x128xi32>
    %16 = arith.muli %14, %15 : vector<16x128xi32>
    %17 = arith.addi %16, %11 : vector<16x128xi32>
    %c2048_i32 = arith.constant 2048 : i32
    %18 = vector.broadcast %c2048_i32 : i32 to vector<16x128xi32>
    %19 = arith.cmpi slt, %17, %18 : vector<16x128xi32>
    %cst_4 = arith.constant 0.000000e+00 : f32
    %20 = vector.broadcast %cst_4 : f32 to vector<16x128xf32>
    %21 = arith.select %19, %9, %20 : vector<16x128xi1>, vector<16x128xf32>
    %c0_5 = arith.constant 0 : index
    %c0_6 = arith.constant 0 : index
    %22 = vector.load %arg4[%c0_5, %c0_6] : memref<8x128xf32, #tpu.memory_space<vmem>>, vector<8x128xf32>
    %23 = vector.shape_cast %21 : vector<16x128xf32> to vector<2x8x128xf32>
    %cst_7 = arith.constant dense<0.000000e+00> : vector<8x128xf32>
    %24 = vector.multi_reduction <add>, %23, %cst_7 [0] : vector<2x8x128xf32> to vector<8x128xf32>
    %25 = arith.addf %22, %24 : vector<8x128xf32>
    %c0_8 = arith.constant 0 : index
    %c0_9 = arith.constant 0 : index
    %26 = vector.load %arg4[%c0_8, %c0_9] : memref<8x128xf32, #tpu.memory_space<vmem>>, vector<8x128xf32>
    tpu.vector_store %arg4[%c0_8, %c0_9], %25 {strides = array<i32>} : memref<8x128xf32, #tpu.memory_space<vmem>>, vector<8x128xf32>,
    %c0_i32_10 = arith.constant 0 : i32
    %27 = arith.cmpi eq, %arg0, %c0_i32_10 : i32
    %28 = arith.extui %27 : i1 to i32
    %c0_i32_11 = arith.constant 0 : i32
    %29 = arith.cmpi ne, %28, %c0_i32_11 : i32
    scf.if %29 {
      %c0_12 = arith.constant 0 : index
      %c0_13 = arith.constant 0 : index
      %30 = vector.load %arg4[%c0_12, %c0_13] : memref<8x128xf32, #tpu.memory_space<vmem>>, vector<8x128xf32>
      %31 = vector.shape_cast %30 : vector<8x128xf32> to vector<1x8x128xf32>
      %cst_14 = arith.constant dense<0.000000e+00> : vector<1xf32>
      %32 = vector.multi_reduction <add>, %31, %cst_14 [1, 2] : vector<1x8x128xf32> to vector<1xf32>
      %33 = vector.shape_cast %32 : vector<1xf32> to vector<1x1x1xf32>
      %34 = vector.extract %33[0, 0, 0] : f32 from vector<1x1x1xf32>
      %35 = vector.broadcast %34 : f32 to vector<1x1xf32>
      %c0_15 = arith.constant 0 : index
      %c0_16 = arith.constant 0 : index
      %36 = vector.load %arg3[%c0_15, %c0_16] : memref<1x1xf32, #tpu.memory_space<vmem>>, vector<1x1xf32>
      tpu.vector_store %arg3[%c0_15, %c0_16], %35 {strides = array<i32>} : memref<1x1xf32, #tpu.memory_space<vmem>>, vector<1x1xf32>,
    } else {
    }
    return
  }
  func.func @transform_0(%arg0: i32) -> (i32, i32) {
    %c0_i32 = arith.constant 0 : i32
    %c0_i32_0 = arith.constant 0 : i32
    return %arg0, %c0_i32 : i32, i32
  }
  func.func @transform_1(%arg0: i32) -> (i32, i32) {
    %c0_i32 = arith.constant 0 : i32
    %c0_i32_0 = arith.constant 0 : i32
    return %arg0, %c0_i32 : i32, i32
  }
  func.func @transform_2(%arg0: i32) -> (i32, i32) {
    %c0_i32 = arith.constant 0 : i32
    %c0_i32_0 = arith.constant 0 : i32
    %c0_i32_1 = arith.constant 0 : i32
    return %c0_i32, %c0_i32_0 : i32, i32
  }
}

</mosaic_0001>

<bundles_post_ra>
// kernel: l1_charbonnier_loss.1
= control target key start
LH: loop header
LB: loop body
LE: loop exit
PB: predicated region body
PF: predicated region fallthrough
CT: control target
= control target key end

     0   :  { %s168_s0 = inlined_call_operand.vmem [shape: f32[16,128], index: 0, kind: input, shape index: {}]   ;;  %s169_s1 = inlined_call_operand.vmem [shape: f32[16,128], index: 1, kind: input, shape index: {}]   ;;  %s170_s2 = inlined_call_operand.hbm [shape: f32[1,1], index: 2, kind: output, shape index: {}]  }
   0x1   :  { %v17_v0 = vld [vmem:[%s168_s0] sm:$0xff]  ;;  %v18_v1 = vld [vmem:[%s168_s0 + $0x8] sm:$0xff] }
   0x2   :  { %v19_v2 = vld [vmem:[%s169_s1] sm:$0xff]  ;;  %v20_v3 = vld [vmem:[%s169_s1 + $0x8] sm:$0xff] }
   0x3   :  { %v21_v4 = vsub.f32 %v17_v0, %v19_v2 }
   0x4   :  { %7 = vsyncpa [#allocation4], 0  ;;  %v22_v5 = vsub.f32 %v18_v1, %v20_v3  ;;  %v51_v10 = vlaneseq  ;;  %s137_s0 = smov [#allocation3]   ;;  %s95_s19 = sshll.u32 %s170_s2, 4  ;;  %vm86_vm6 = vcmask 0   ;;  %s96_s19 = int_to_ptr.hbm [resolvable:$true] %s95_s19 }
   0x5   :  { %v23_v6 = vmul.f32 %v21_v4, %v21_v4  ;;  %s93_s1 = sshll.u32 %s137_s0, 4  ;;  %s94_s1 = int_to_ptr.vmem [resolvable:$true] %s93_s1 }
   0x6   :  { %v24_v7 = vmul.f32 %v22_v5, %v22_v5  ;;  %v52_v11 = vshrl.u32 %v51_v10, 7  ;;  %v55_v19 = vand.u32 127, %v51_v10 }
   0x7   :  { %v25_v8 = vadd.f32 1e-06, %v23_v6 }
   0x8   :  { %v26_v9 = vadd.f32 1e-06, %v24_v7  ;;  %v53_v15 = vadd.s32 8, %v52_v11  ;;  %v60_v20 = vmul.u32 128, %v52_v11 }
   0x9   :  { %107 = vrsqrt.f32 %v25_v8  ;;  %vm34_vm0 = vcmp.eq.f32.partialorder %v25_v8, inf  ;;  %v37_v29 = vand.u32 2147483648, %v25_v8  ;;  %vm36_vm1 = vcmp.eq.f32.partialorder %v25_v8, 0.0 }
   0xa   :  { %109 = vrsqrt.f32 %v26_v9  ;;  %v61_v22 = vmul.u32 128, %v53_v15  ;;  %v62_v26 = vadd.s32 %v60_v20, %v55_v19  ;;  %vm46_vm2 = vcmp.eq.f32.partialorder %v26_v9, inf }
   0xb   :  { %v49_v32 = vand.u32 2147483648, %v26_v9  ;;  %vm48_vm3 = vcmp.eq.f32.partialorder %v26_v9, 0.0 }
   0xc   :  { %v63_v28 = vadd.s32 %v61_v22, %v55_v19  ;;  %vm64_vm4 = vcmp.lt.s32.totalorder %v62_v26, 2048 }
   0xe   :  { %vm65_vm5 = vcmp.lt.s32.totalorder %v63_v28, 2048 }
   0xf   :  { %v108_v12 = vpop.eup %107 }
  0x10   :  { %v110_v13 = vpop.eup %109  ;;  %v28_v14 = vmul.f32 %v108_v12, %v25_v8 }
  0x11   :  { %v40_v16 = vmul.f32 %v110_v13, %v26_v9 }
  0x12   :  { %v29_v17 = vmul.f32 %v108_v12, %v28_v14 }
  0x13   :  { %v41_v18 = vmul.f32 %v110_v13, %v40_v16 }
  0x14   :  { %v30_v21 = vmul.f32 0.5, %v29_v17 }
  0x15   :  { %v42_v23 = vmul.f32 0.5, %v41_v18 }
  0x16   :  { %v31_v24 = vsub.f32 1.5, %v30_v21 }
  0x17   :  { %v43_v25 = vsub.f32 1.5, %v42_v23 }
  0x18   :  { %v32_v27 = vmul.f32 %v108_v12, %v31_v24 }
  0x19   :  { %v44_v30 = vmul.f32 %v110_v13, %v43_v25 }
  0x1a   :  { %v33_v31 = vmul.f32 %v32_v27, %v25_v8 }
  0x1b   :  { %v45_v33 = vmul.f32 %v44_v30, %v26_v9 }
  0x1c   :  { %v35_v34 = vsel %vm34_vm0, %v25_v8, %v33_v31 }
  0x1d   :  { %v38_v35 = vsel %vm36_vm1, %v37_v29, %v35_v34  ;;  %v47_v36 = vsel %vm46_vm2, %v26_v9, %v45_v33 }
  0x1e   :  { %v50_v37 = vsel %vm48_vm3, %v49_v32, %v47_v36  ;;  %v66_v38 = vsel %vm64_vm4, %v38_v35, 0.0 }
  0x1f   :  { %v67_v39 = vsel %vm65_vm5, %v50_v37, 0.0 }
  0x20   :  { %v69_v40 = vadd.f32 %v67_v39, %v66_v38 }
  0x22   :  { %76 = vadd.xlane.f32.xlu0 %v69_v40 }
  0x95   :  { %v77_v41 = vpop.xlane.xlu0 %76 }
  0x96   :  { %v78_v42 = vrot.slane %v77_v41, 4 }
  0x98   :  { %v79_v43 = vadd.f32 %v78_v42, %v77_v41 }
  0x9a   :  { %v80_v44 = vrot.slane %v79_v43, 2 }
  0x9c   :  { %v81_v45 = vadd.f32 %v80_v44, %v79_v43 }
  0x9e   :  { %v82_v46 = vrot.slane %v81_v45, 1 }
  0xa0   :  { %v83_v47 = vadd.f32 %v82_v46, %v81_v45 }
  0xa2   :  { %104 = vpush %v83_v47 }
  0xd3   :  { %s105_s20 = spop %104 }
  0xd4   :  { %v85_v48 = vstv %s105_s20 }
  0xd5   :  { %87 = vst.msk [vmem:[#allocation3] sm:$0x1] %vm86_vm6, %v85_v48 }
  0xd6   :  { %98 = dma.vmem_to_hbm [thread:$0]  %s94_s1, 16, %s96_s19, [#allocation4]  }
  0xd7   :  { %135 = dma.done.wait [#allocation4], 16  }
  0xd8   :  { %136 = vsyncadd [#allocation4], 4294967280 }
  0xd9   :  { %103 = vsyncpa [#allocation4], 1 }

</bundles_post_ra>
